<compile_context>
chip_gen: v6e
topology: v6e:2x2x1
jax: 0.10.0
libtpu: 0.0.40
codegen_flags: <defaults>
</compile_context>

<pallas_src>
import functools

import jax
import jax.numpy as jnp
from jax import lax
from jax.experimental import pallas as pl
from jax.experimental.pallas import tpu as pltpu


def _round_up(x, m):
    return ((x + m - 1) // m) * m


def _vmem_capacity_bytes():
    """Physical VMEM of the local chip; conservative (v7x-level) fallback."""
    try:
        return int(pltpu.get_tpu_info().vmem_capacity_bytes)
    except Exception:
        return 64 * 1024 * 1024


def _choose_tiling(batch, c_pad, itemsize, vmem_limit):
    """Pick tile_b from a byte budget, not a row cap.

    Working set per tile row:
      2x native-dtype logits row (double-buffered input DMA)
      + ~3x f32 rows for the in-kernel upcast / diff / log intermediates.
    """
    per_row = 2 * c_pad * itemsize + 3 * c_pad * 4
    budget = (vmem_limit * 3) // 4                    # headroom under the scoped limit
    tile_b = max(8, ((budget // per_row) // 8) * 8)   # sublane-aligned

    b_pad8 = _round_up(batch, 8)
    tile_b = min(tile_b, b_pad8)
    num_tiles = -(-b_pad8 // tile_b)
    # Rebalance so trailing-row padding is minimal.
    tile_b = _round_up(-(-b_pad8 // num_tiles), 8)
    b_pad = num_tiles * tile_b
    return tile_b, num_tiles, b_pad


def _margin_loss_kernel(col_ref, logits_ref, target_ref, out_ref, *,
                        num_labels, col_masked):
    """One batch tile: (8, C_pad) lane-dense partial sum of log-differences."""
    logits = logits_ref[...].astype(jnp.float32)       # (tb, Cp), upcast in-kernel
    tgt = target_ref[...]                              # (tb, 1) int32
    col = col_ref[...]                                 # (1, Cp) int32, resident

    masked = col == tgt                                # one-hot of target, no gather
    if col_masked:
        masked = masked | (col >= num_labels)          # hide padded class columns

    # per-row probability of the true class (select + lane reduce; padded columns
    # contribute 0 because they were zero-padded in the wrapper)
    tgt_prob = jnp.sum(jnp.where(masked, logits, 0.0), axis=1, keepdims=True)

    # difference to every class; masked positions (target column, padded columns,
    # padded rows handled by the wrapper's one_hot(0) padding) see log(1) = 0.
    diff = tgt_prob - logits
    log_in = jnp.where(masked, 1.0, diff)
    logs = jnp.log(log_in)

    # per-tile partial: reduce over rows, write lane-dense into row 0 of the
    # sublane-aligned (8, Cp) output block (rows 1..7 are zero).
    s = jnp.sum(logs, axis=0, keepdims=True)           # (1, Cp)
    row8 = lax.broadcasted_iota(jnp.int32, (8, logs.shape[1]), 0)
    out_ref[...] = jnp.where(row8 == 0, s, 0.0)


def specialized_margin_loss(logits_prob, target):
    """logits_prob: [batch, num_labels] float (f32 or bf16), target: [batch] int."""
    batch, num_labels = logits_prob.shape
    dtype = logits_prob.dtype
    itemsize = jnp.dtype(dtype).itemsize

    c_pad = _round_up(num_labels, 128)                 # lane-dense class axis
    vmem_cap = _vmem_capacity_bytes()
    vmem_limit = max(min(vmem_cap // 2, 64 * 1024 * 1024), 16 * 1024 * 1024)
    tile_b, num_tiles, b_pad = _choose_tiling(batch, c_pad, itemsize, vmem_limit)

    # Column padding with zeros; masked in-kernel via col_ids >= num_labels.
    if c_pad != num_labels:
        logits_prob = jnp.pad(logits_prob, ((0, 0), (0, c_pad - num_labels)))

    tgt2d = target.astype(jnp.int32).reshape(batch, 1)

    # Row padding: padded rows are one_hot(0) with target 0 so every unmasked
    # column gives diff = 1 -> log(1) = 0; no in-kernel row mask needed.
    if b_pad != batch:
        pad_rows = b_pad - batch
        pad_block = jnp.zeros((pad_rows, c_pad), dtype).at[:, 0].set(1)
        logits_prob = jnp.concatenate([logits_prob, pad_block], axis=0)
        tgt2d = jnp.concatenate(
            [tgt2d, jnp.zeros((pad_rows, 1), jnp.int32)], axis=0)

    col_ids = jnp.arange(c_pad, dtype=jnp.int32).reshape(1, c_pad)

    kernel = functools.partial(
        _margin_loss_kernel,
        num_labels=num_labels,
        col_masked=(c_pad != num_labels),
    )

    partials = pl.pallas_call(
        kernel,
        out_shape=jax.ShapeDtypeStruct((num_tiles * 8, c_pad), jnp.float32),
        grid=(num_tiles,),
        in_specs=[
            pl.BlockSpec((1, c_pad), lambda i: (0, 0)),        # resident column ids
            # On v5e with small tiles, pipeline_mode=pl.Buffered(3) here can hide
            # DMA issue latency; left at the default double-buffering for safety.
            pl.BlockSpec((tile_b, c_pad), lambda i: (i, 0)),   # logits tile
            pl.BlockSpec((tile_b, 1), lambda i: (i, 0)),       # target tile
        ],
        out_specs=pl.BlockSpec((8, c_pad), lambda i: (i, 0)),
        compiler_params=pltpu.CompilerParams(
            # On v7x, try dimension_semantics=(pltpu.CORE_PARALLEL,) to split the
            # batch-tile axis across both TensorCores (verify partials indexing).
            dimension_semantics=("parallel",),
            vmem_limit_bytes=vmem_limit,
        ),
        cost_estimate=pl.CostEstimate(
            flops=4 * b_pad * c_pad,
            transcendentals=b_pad * c_pad,
            bytes_accessed=b_pad * c_pad * itemsize
            + b_pad * 4
            + c_pad * 4
            + num_tiles * 8 * c_pad * 4,
        ),
    )(col_ids, logits_prob, tgt2d)

    # Tiny final reduction + scale in the wrapper (keeps the grid axis parallel).
    return -jnp.sum(partials) / jnp.float32(batch * (num_labels - 1))


def _reference(logits_prob, target):
    logits_prob = logits_prob.astype(jnp.float32)
    b, c = logits_prob.shape
    onehot = jax.nn.one_hot(target, c, dtype=jnp.float32)
    tgt_prob = jnp.sum(logits_prob * onehot, axis=1, keepdims=True)   # (B, 1)
    diff = tgt_prob - logits_prob                                     # (B, C)
    mask = onehot == 1.0
    log_diff = jnp.where(mask, 0.0, jnp.log(jnp.where(mask, 1.0, diff)))
    return -jnp.sum(log_diff) / (b * (c - 1))


def _make_inputs(key, batch, num_labels, dtype):
    k1, k2 = jax.random.split(key)
    target = jax.random.randint(k1, (batch,), 0, num_labels)
    # Build probabilities where the target class dominates so every
    # difference is positive (log is defined), mimicking "normalized" inputs.
    raw = jax.random.uniform(k2, (batch, num_labels), dtype=jnp.float32)
    boost = 10.0 * jax.nn.one_hot(target, num_labels, dtype=jnp.float32)
    logits_prob = jax.nn.softmax(raw + boost, axis=-1).astype(dtype)
    return logits_prob, target


if __name__ == "__main__":
    key = jax.random.PRNGKey(0)
    k_a, k_b, k_c = jax.random.split(key, 3)

    cases = [
        # (key, batch, num_labels, dtype)
        (k_a, 8, 16, jnp.float32),     # column padding (16 -> 128), no row padding
        (k_b, 10, 20, jnp.bfloat16),   # bf16 ingress + column + row padding
        (k_c, 16, 128, jnp.float32),   # lane-dense classes, no padding at all
    ]
    for k, b, c, dt in cases:
        logits, target = _make_inputs(k, batch=b, num_labels=c, dtype=dt)
        loss = specialized_margin_loss(logits, target)
        jax.block_until_ready(loss)
        ref = _reference(logits, target)
        tol = 1e-5 if dt == jnp.float32 else 1e-4
        assert jnp.allclose(loss, ref, rtol=tol, atol=tol), (b, c, dt, loss, ref)

    print("KERNEL_OK")
</pallas_src>

<mosaic_0001>
module attributes {stable_mosaic.version = 11 : i64} {
  func.func @_margin_loss_kernel(%arg0: i32, %arg1: memref<1x128xi32, #tpu.memory_space<vmem>>, %arg2: memref<8x128xf32, #tpu.memory_space<vmem>>, %arg3: memref<8x1xi32, #tpu.memory_space<vmem>>, %arg4: memref<8x128xf32, #tpu.memory_space<vmem>>) attributes {dimension_semantics = [#tpu.dimension_semantics<parallel>], iteration_bounds = array<i64: 1>, scalar_prefetch = 0 : i64, scratch_operands = 0 : i64, tpu.core_type = #tpu.core_type<tc>, window_params = [{pipeline_mode = #tpu.pipeline_mode<synchronous>, transform_indices = @transform_0, window_bounds = array<i64: 1, 128>}, {transform_indices = @transform_1, window_bounds = array<i64: 8, 128>}, {transform_indices = @transform_2, window_bounds = array<i64: 8, 1>}, {transform_indices = @transform_3, window_bounds = array<i64: 8, 128>}]} {
    %c0 = arith.constant 0 : index
    %c0_0 = arith.constant 0 : index
    %0 = vector.load %arg2[%c0, %c0_0] : memref<8x128xf32, #tpu.memory_space<vmem>>, vector<8x128xf32>
    %c0_1 = arith.constant 0 : index
    %c0_2 = arith.constant 0 : index
    %1 = vector.load %arg3[%c0_1, %c0_2] : memref<8x1xi32, #tpu.memory_space<vmem>>, vector<8x1xi32>
    %c0_3 = arith.constant 0 : index
    %c0_4 = arith.constant 0 : index
    %2 = vector.load %arg1[%c0_3, %c0_4] : memref<1x128xi32, #tpu.memory_space<vmem>>, vector<1x128xi32>
    %3 = vector.broadcast %2 : vector<1x128xi32> to vector<8x128xi32>
    %4 = vector.broadcast %1 : vector<8x1xi32> to vector<8x128xi32>
    %5 = arith.cmpi eq, %3, %4 : vector<8x128xi32>
    %c16_i32 = arith.constant 16 : i32
    %6 = vector.broadcast %c16_i32 : i32 to vector<1x128xi32>
    %7 = arith.cmpi sge, %2, %6 : vector<1x128xi32>
    %8 = vector.broadcast %7 : vector<1x128xi1> to vector<8x128xi1>
    %9 = arith.ori %5, %8 : vector<8x128xi1>
    %cst = arith.constant 0.000000e+00 : f32
    %10 = vector.broadcast %cst : f32 to vector<8x128xf32>
    %11 = arith.select %9, %0, %10 : vector<8x128xi1>, vector<8x128xf32>
    %cst_5 = arith.constant dense<0.000000e+00> : vector<8xf32>
    %12 = vector.multi_reduction <add>, %11, %cst_5 [1] : vector<8x128xf32> to vector<8xf32>
    %13 = vector.shape_cast %12 : vector<8xf32> to vector<8x1xf32>
    %14 = vector.broadcast %13 : vector<8x1xf32> to vector<8x128xf32>
    %15 = arith.subf %14, %0 : vector<8x128xf32>
    %cst_6 = arith.constant 1.000000e+00 : f32
    %16 = vector.broadcast %cst_6 : f32 to vector<8x128xf32>
    %17 = arith.select %9, %16, %15 : vector<8x128xi1>, vector<8x128xf32>
    %18 = math.log %17 : vector<8x128xf32>
    %cst_7 = arith.constant dense<0.000000e+00> : vector<128xf32>
    %19 = vector.multi_reduction <add>, %18, %cst_7 [0] : vector<8x128xf32> to vector<128xf32>
    %20 = vector.shape_cast %19 : vector<128xf32> to vector<1x128xf32>
    %21 = tpu.iota {dimensions = array<i32: 0>} : vector<8x128xi32>
    %c0_i32 = arith.constant 0 : i32
    %22 = vector.broadcast %c0_i32 : i32 to vector<8x128xi32>
    %23 = arith.cmpi eq, %21, %22 : vector<8x128xi32>
    %cst_8 = arith.constant 0.000000e+00 : f32
    %24 = vector.shape_cast %20 : vector<1x128xf32> to vector<1x128xf32>
    %25 = vector.broadcast %24 : vector<1x128xf32> to vector<8x128xf32>
    %26 = vector.broadcast %cst_8 : f32 to vector<8x128xf32>
    %27 = arith.select %23, %25, %26 : vector<8x128xi1>, vector<8x128xf32>
    %c0_9 = arith.constant 0 : index
    %c0_10 = arith.constant 0 : index
    %28 = vector.load %arg4[%c0_9, %c0_10] : memref<8x128xf32, #tpu.memory_space<vmem>>, vector<8x128xf32>
    tpu.vector_store %arg4[%c0_9, %c0_10], %27 {strides = array<i32>} : memref<8x128xf32, #tpu.memory_space<vmem>>, vector<8x128xf32>,
    return
  }
  func.func @transform_0(%arg0: i32) -> (i32, i32) {
    %c0_i32 = arith.constant 0 : i32
    %c0_i32_0 = arith.constant 0 : i32
    %c0_i32_1 = arith.constant 0 : i32
    return %c0_i32, %c0_i32_0 : i32, i32
  }
  func.func @transform_1(%arg0: i32) -> (i32, i32) {
    %c0_i32 = arith.constant 0 : i32
    %c0_i32_0 = arith.constant 0 : i32
    return %arg0, %c0_i32 : i32, i32
  }
  func.func @transform_2(%arg0: i32) -> (i32, i32) {
    %c0_i32 = arith.constant 0 : i32
    %c0_i32_0 = arith.constant 0 : i32
    return %arg0, %c0_i32 : i32, i32
  }
  func.func @transform_3(%arg0: i32) -> (i32, i32) {
    %c0_i32 = arith.constant 0 : i32
    %c0_i32_0 = arith.constant 0 : i32
    return %arg0, %c0_i32 : i32, i32
  }
}

</mosaic_0001>

<bundles_post_ra>
// kernel: tpu_custom_call.1
= control target key start
LH: loop header
LB: loop body
LE: loop exit
PB: predicated region body
PF: predicated region fallthrough
CT: control target
= control target key end

     0   :  { %v93_v1 = vmov 0   ;;  %s127_s0 = inlined_call_operand.vmem [shape: s32[1,128], index: 0, kind: input, shape index: {}]   ;;  %s128_s1 = inlined_call_operand.vmem [shape: f32[8,128], index: 1, kind: input, shape index: {}]   ;;  %s129_s2 = inlined_call_operand.vmem [shape: s32[8,1], index: 2, kind: input, shape index: {}]   ;;  %s130_s3 = inlined_call_operand.hbm [shape: f32[8,128], index: 3, kind: output, shape index: {}]  }
   0x1   :  { %v16_v0 = vld [vmem:[%s129_s2] sm:$0xff]  ;;  %68 = vset.pattern.permute.xlu0 %v93_v1 }
   0x2   :  { %8 = vsyncpa [#allocation3], 0  ;;  %23 = vperm.xlu0 %68, %v16_v0   ;;  %v18_v2 = vlaneseq  ;;  %v17_v3 = vld [vmem:[%s127_s0] sm:$0x1]  ;;  %s94_s0 = smov [#allocation2]  }
   0x3   :  { %vm26_vm0 = vcmp.ge.s32.totalorder %v17_v3, 16  ;;  %v15_v10 = vld [vmem:[%s128_s1] sm:$0xff]  ;;  %s58_s2 = sshll.u32 %s94_s0, 4  ;;  %s59_s2 = int_to_ptr.vmem [resolvable:$true] %s58_s2 }
   0x4   :  { %v19_v4 = vshrl.u32 %v18_v2, 7  ;;  %v27_v6 = vsel %vm26_vm0, 1, %v93_v1  ;;  %s71_s1 = scalar_lea.vmem %s59_s2, 128  ;;  %p76_p1 = scmp.lt.s32.totalorder %s59_s2, %s59_s2 }
   0x5   :  { %p72_p0 = scmp.ne.s32.totalorder %s59_s2, %s71_s1  ;;  %p77_p2 = scmp.lt.s32.totalorder %s71_s1, %s71_s1 }
   0x6   :  { %v20_v5 = vsub.s32 0, %v19_v4  ;;  %vm49_vm4 = vcmp.eq.s32.totalorder %v19_v4, 0 }
   0x7   :  { %p78_p3 = por %p77_p2, %p76_p1 }
   0x8   :  { %v31_v7 = vrot.slane %v27_v6, %v20_v5  ;;  %v21_v8 = vrot.slane %v17_v3, %v20_v5 }
   0x9   :  { %p79_p4 = pnand %p78_p3, %p72_p0 }
   0xa   :  { %vm32_vm1 = vcmp.eq.s32.totalorder %v31_v7, 1 }
  0x7d   :  { %v24_v9 = vpop.permute.xlu0 %23 }
  0x7e   :  { %vm25_vm2 = vcmp.eq.s32.totalorder %v21_v8, %v24_v9 }
  0x7f   :  { %vm33_vm3 = vmor %vm25_vm2, %vm32_vm1 }
  0x80   :  { %v34_v11 = vsel %vm33_vm3, %v15_v10, 0.0 }
  0x81   :  { %35 = vadd.xlane.f32.xlu0 %v34_v11 }
 0x10a   :  { %v36_v12 = vpop.xlane.xlu0 %35 }
 0x10b   :  { %v37_v13 = vsub.f32 %v36_v12, %v15_v10 }
 0x10d   :  { %v38_v14 = vsel %vm33_vm3, 1.0, %v37_v13 }
 0x10e   :  { %69 = vlog2.f32 %v38_v14 }
 0x11b   :  { %v70_v15 = vpop.eup %69 }
 0x11c   :  { %v40_v16 = vmul.f32 0.6931472, %v70_v15 }
 0x11e   :  { %v41_v17 = vrot.slane %v40_v16, 4 }
 0x120   :  { %v42_v18 = vadd.f32 %v41_v17, %v40_v16 }
 0x122   :  { %v43_v19 = vrot.slane %v42_v18, 2 }
 0x124   :  { %v44_v20 = vadd.f32 %v43_v19, %v42_v18 }
 0x126   :  { %v45_v21 = vrot.slane %v44_v20, 1 }
 0x128   :  { %v46_v22 = vadd.f32 %v45_v21, %v44_v20 }
 0x12a   :  { %v50_v23 = vsel %vm49_vm4, %v46_v22, 0.0 }
 0x12b   :  { %51 = vst [vmem:[#allocation2] sm:$0xff] %v50_v23 }
 0x12c   :  { %82 = shalt.err (!%p79_p4)
}
 0x12d   :  { %61 = dma.vmem_to_hbm [thread:$0]  %s59_s2, 128, %s130_s3, [#allocation3]  }
 0x12e   :  { %91 = dma.done.wait [#allocation3], 128  }
 0x12f   :  { %92 = vsyncadd [#allocation3], 4294967168 }
 0x130   :  { %65 = vsyncpa [#allocation3], 1 }

</bundles_post_ra>
